<compile_context>
chip_gen: v7x
topology: tpu7x:2x2x1
jax: 0.10.0
libtpu: 0.0.40
codegen_flags: <defaults>
</compile_context>

<pallas_src>
import jax
import jax.numpy as jnp
from jax.experimental import pallas as pl
from jax.experimental.pallas import tpu as pltpu  # noqa: F401  (TPU backend)

# ---- deterministic model parameters (from opt / mm_params / sensor_params) ----
TAU = 1.0          # opt.tau
MEAS_VAR_R = 0.01  # sensor R (y = x + e, e ~ N(0, R))


def _atrapp_step_kernel(locs_ref, vels_ref, z_ref, lnw_ref,
                        new_locs_ref, new_lnw_ref, parents_ref):
    # Layouts (grid=(), whole arrays resident in VMEM):
    #   locs_ref, vels_ref : (B, T2, N)  particles on LANES (N=128 -> full vregs)
    #   z_ref              : (B, T2, 1)  single lane, broadcast across particles
    #   lnw_ref            : (B, N)      particles on lanes (native weight layout)
    locs = locs_ref[...]
    vels = vels_ref[...]

    # --- prediction (motion model, mean propagation: is_first_sample_mu) ---
    new_locs = locs + TAU * vels                  # x_{k+1} = x_k + tau * v_k
    new_locs_ref[...] = new_locs                  # lane-dense, unmasked stores

    # --- measurement update: Gaussian log-likelihood per particle ---
    # Sublane (T2=8 deep) reduction -> (B, N) result already matches the
    # lane-major weight layout; no relayout. Kept on VPU+XLU, not MXU.
    diff = new_locs - z_ref[...]                  # lane-broadcast of z
    sq = jnp.sum(diff * diff, axis=-2)            # (B, N)
    # Gaussian log-normalization constant cancels in the LSE below -> dropped.
    lnw = lnw_ref[...] + (-0.5 / MEAS_VAR_R) * sq  # (B, N)

    # stable per-batch log-sum-exp over the particle (lane) axis
    m = jnp.max(lnw, axis=-1, keepdims=True)                       # (B, 1)
    lse = m + jnp.log(jnp.sum(jnp.exp(lnw - m), axis=-1, keepdims=True))
    new_lnw_ref[...] = lnw - lse

    # identity parent indices, fused into the same launch.
    # TODO(synk): replace with the systematic-resampling gather once the
    #             external `atrapp` resampling / NN3 correction are ported.
    parents_ref[...] = jax.lax.broadcasted_iota(jnp.int32, parents_ref.shape, 1)


@jax.jit
def atrapp_forward(prts_locs, prts_vels, ln_weights, z_for_meas):
    """prts_locs, prts_vels: (B, N, T, 2); ln_weights: (B, N); z: (B, T, 2)."""
    B, N, T, D = prts_locs.shape
    assert D == 2
    T2 = T * D

    # Lane-major particle layout for the kernel: (B, T2, N).  The transpose is
    # wrapper-side layout plumbing; inside the kernel every vreg is lane-dense.
    locs_k = jnp.transpose(prts_locs.reshape(B, N, T2), (0, 2, 1)).astype(jnp.float32)
    vels_k = jnp.transpose(prts_vels.reshape(B, N, T2), (0, 2, 1)).astype(jnp.float32)
    z_k = z_for_meas.reshape(B, T2, 1).astype(jnp.float32)
    lnw_k = ln_weights.astype(jnp.float32)

    new_locs_k, ln_new_weights, parents_indces = pl.pallas_call(
        _atrapp_step_kernel,
        out_shape=(
            jax.ShapeDtypeStruct((B, T2, N), jnp.float32),  # new particle locations
            jax.ShapeDtypeStruct((B, N), jnp.float32),      # normalized log-weights
            jax.ShapeDtypeStruct((B, N), jnp.int32),        # parent indices
        ),
        # new_locs writes back into locs' HBM buffer (no extra allocation/copy
        # per filter iteration; locs_k is a computation intermediate -> donatable).
        input_output_aliases={0: 0},
    )(locs_k, vels_k, z_k, lnw_k)

    new_prts_locs = jnp.transpose(new_locs_k, (0, 2, 1)).reshape(B, N, T, D)
    # KF velocity update: (new_locs - locs) / tau == vels exactly under the
    # deterministic mean propagation implemented here -> return unchanged.
    # TODO(synk): becomes non-trivial once process noise / NN3 / resampling land.
    new_prts_vels = prts_vels.astype(jnp.float32)
    return new_prts_locs, new_prts_vels, ln_new_weights, parents_indces


def _reference(prts_locs, prts_vels, ln_weights, z_for_meas):
    """Pure-JAX reference of the same forward step (for correctness check)."""
    new_locs = prts_locs + TAU * prts_vels
    diff = new_locs - z_for_meas[:, None, :, :]
    loglik = -0.5 * jnp.sum(diff * diff, axis=(-2, -1)) / MEAS_VAR_R
    lnw = ln_weights + loglik
    lnw = lnw - jax.scipy.special.logsumexp(lnw, axis=-1, keepdims=True)
    return new_locs, lnw


if __name__ == "__main__":
    key = jax.random.PRNGKey(0)
    B, N, T = 2, 128, 4   # batch, particles, targets

    k1, k2, k3 = jax.random.split(key, 3)
    prts_locs = jax.random.normal(k1, (B, N, T, 2), dtype=jnp.float32) * 2.0
    prts_vels = jax.random.normal(k2, (B, N, T, 2), dtype=jnp.float32) * 0.1
    ln_weights = jnp.full((B, N), -jnp.log(float(N)), dtype=jnp.float32)
    z_for_meas = jax.random.normal(k3, (B, T, 2), dtype=jnp.float32) * 2.0

    new_locs, new_vels, ln_new_w, parents = jax.block_until_ready(
        atrapp_forward(prts_locs, prts_vels, ln_weights, z_for_meas))

    assert new_locs.shape == (B, N, T, 2)
    assert new_vels.shape == (B, N, T, 2)
    assert ln_new_w.shape == (B, N)
    assert parents.shape == (B, N)
    assert parents.dtype == jnp.int32

    ref_locs, ref_lnw = _reference(prts_locs, prts_vels, ln_weights, z_for_meas)
    assert jnp.allclose(new_locs, ref_locs, atol=1e-5)
    assert jnp.allclose(ln_new_w, ref_lnw, atol=1e-4)
    # normalized log-weights should sum (in prob space) to ~1 per batch
    assert jnp.allclose(jnp.sum(jnp.exp(ln_new_w), axis=-1), 1.0, atol=1e-4)
    # identity parents
    assert jnp.array_equal(
        parents, jnp.broadcast_to(jnp.arange(N, dtype=jnp.int32)[None, :], (B, N)))
    print("KERNEL_OK")
</pallas_src>

<mosaic_0001>
module attributes {stable_mosaic.version = 11 : i64} {
  func.func @_atrapp_step_kernel(%arg0: memref<2x8x128xf32, #tpu.memory_space<vmem>>, %arg1: memref<2x8x128xf32, #tpu.memory_space<vmem>>, %arg2: memref<2x8x1xf32, #tpu.memory_space<vmem>>, %arg3: memref<2x128xf32, #tpu.memory_space<vmem>>, %arg4: memref<2x8x128xf32, #tpu.memory_space<vmem>>, %arg5: memref<2x128xf32, #tpu.memory_space<vmem>>, %arg6: memref<2x128xi32, #tpu.memory_space<vmem>>) attributes {dimension_semantics = [], scalar_prefetch = 0 : i64, scratch_operands = 0 : i64, tpu.core_type = #tpu.core_type<tc>} {
    %c0 = arith.constant 0 : index
    %c0_0 = arith.constant 0 : index
    %c0_1 = arith.constant 0 : index
    %0 = vector.load %arg0[%c0, %c0_0, %c0_1] : memref<2x8x128xf32, #tpu.memory_space<vmem>>, vector<2x8x128xf32>
    %c0_2 = arith.constant 0 : index
    %c0_3 = arith.constant 0 : index
    %c0_4 = arith.constant 0 : index
    %1 = vector.load %arg1[%c0_2, %c0_3, %c0_4] : memref<2x8x128xf32, #tpu.memory_space<vmem>>, vector<2x8x128xf32>
    %cst = arith.constant 1.000000e+00 : f32
    %2 = vector.broadcast %cst : f32 to vector<2x8x128xf32>
    %3 = arith.mulf %2, %1 : vector<2x8x128xf32>
    %4 = arith.addf %0, %3 : vector<2x8x128xf32>
    %c0_5 = arith.constant 0 : index
    %c0_6 = arith.constant 0 : index
    %c0_7 = arith.constant 0 : index
    %5 = vector.load %arg4[%c0_5, %c0_6, %c0_7] : memref<2x8x128xf32, #tpu.memory_space<vmem>>, vector<2x8x128xf32>
    tpu.vector_store %arg4[%c0_5, %c0_6, %c0_7], %4 {strides = array<i32>} : memref<2x8x128xf32, #tpu.memory_space<vmem>>, vector<2x8x128xf32>,
    %c0_8 = arith.constant 0 : index
    %c0_9 = arith.constant 0 : index
    %c0_10 = arith.constant 0 : index
    %6 = vector.load %arg2[%c0_8, %c0_9, %c0_10] : memref<2x8x1xf32, #tpu.memory_space<vmem>>, vector<2x8x1xf32>
    %7 = vector.broadcast %6 : vector<2x8x1xf32> to vector<2x8x128xf32>
    %8 = arith.subf %4, %7 : vector<2x8x128xf32>
    %9 = arith.mulf %8, %8 : vector<2x8x128xf32>
    %cst_11 = arith.constant dense<0.000000e+00> : vector<2x128xf32>
    %10 = vector.multi_reduction <add>, %9, %cst_11 [1] : vector<2x8x128xf32> to vector<2x128xf32>
    %c0_12 = arith.constant 0 : index
    %c0_13 = arith.constant 0 : index
    %11 = vector.load %arg3[%c0_12, %c0_13] : memref<2x128xf32, #tpu.memory_space<vmem>>, vector<2x128xf32>
    %cst_14 = arith.constant -5.000000e+01 : f32
    %12 = vector.broadcast %cst_14 : f32 to vector<2x128xf32>
    %13 = arith.mulf %12, %10 : vector<2x128xf32>
    %14 = arith.addf %11, %13 : vector<2x128xf32>
    %cst_15 = arith.constant dense<0xFF800000> : vector<2xf32>
    %15 = vector.multi_reduction <maximumf>, %14, %cst_15 [1] : vector<2x128xf32> to vector<2xf32>
    %16 = vector.shape_cast %15 : vector<2xf32> to vector<2x1xf32>
    %17 = vector.broadcast %16 : vector<2x1xf32> to vector<2x128xf32>
    %18 = arith.subf %14, %17 : vector<2x128xf32>
    %19 = math.exp %18 : vector<2x128xf32>
    %cst_16 = arith.constant dense<0.000000e+00> : vector<2xf32>
    %20 = vector.multi_reduction <add>, %19, %cst_16 [1] : vector<2x128xf32> to vector<2xf32>
    %21 = vector.shape_cast %20 : vector<2xf32> to vector<2x1xf32>
    %22 = math.log %21 : vector<2x1xf32>
    %23 = arith.addf %16, %22 : vector<2x1xf32>
    %24 = vector.broadcast %23 : vector<2x1xf32> to vector<2x128xf32>
    %25 = arith.subf %14, %24 : vector<2x128xf32>
    %c0_17 = arith.constant 0 : index
    %c0_18 = arith.constant 0 : index
    %26 = vector.load %arg5[%c0_17, %c0_18] : memref<2x128xf32, #tpu.memory_space<vmem>>, vector<2x128xf32>
    tpu.vector_store %arg5[%c0_17, %c0_18], %25 {strides = array<i32>} : memref<2x128xf32, #tpu.memory_space<vmem>>, vector<2x128xf32>,
    %27 = tpu.iota {dimensions = array<i32: 1>} : vector<2x128xi32>
    %c0_19 = arith.constant 0 : index
    %c0_20 = arith.constant 0 : index
    %28 = vector.load %arg6[%c0_19, %c0_20] : memref<2x128xi32, #tpu.memory_space<vmem>>, vector<2x128xi32>
    tpu.vector_store %arg6[%c0_19, %c0_20], %27 {strides = array<i32>} : memref<2x128xi32, #tpu.memory_space<vmem>>, vector<2x128xi32>,
    return
  }
}

</mosaic_0001>

<bundles_post_ra>
// kernel: atrapp_forward.1
= control target key start
LH: loop header
LB: loop body
LE: loop exit
PB: predicated region body
PF: predicated region fallthrough
CT: control target
= control target key end

     0   :  { %12 = vsyncpa [#allocation3], 0  ;;  %v173_v2 = vmov 0   ;;  %s262_s0 = inlined_call_operand.vmem [shape: f32[2,8,128], index: 0, kind: input, shape index: {}, may-alias: {0,4}]   ;;  %s263_s1 = inlined_call_operand.vmem [shape: f32[2,8,128], index: 1, kind: input, shape index: {}]   ;;  %s264_s2 = inlined_call_operand.vmem [shape: f32[2,8,1], index: 2, kind: input, shape index: {}]   ;;  %s265_s3 = inlined_call_operand.vmem [shape: f32[2,128], index: 3, kind: input, shape index: {}]   ;;  %s266_s4 = inlined_call_operand.vmem [shape: f32[2,8,128], index: 4, kind: output, shape index: {0}, may-alias: {0,4}]   ;;  %s267_s5 = inlined_call_operand.hbm [shape: f32[2,128], index: 5, kind: output, shape index: {1}]   ;;  %s268_s6 = inlined_call_operand.hbm [shape: s32[2,128], index: 6, kind: output, shape index: {2}]  }
   0x1   :  { %v30_v0 = vld [vmem:[%s264_s2] sm:$0xff]  ;;  %120 = vset.pattern.permute.xlu0 %v173_v2 }
   0x2   :  { %v22_v1 = vld [vmem:[%s262_s0] sm:$0xff] }
   0x3   :  { %v24_v3 = vld [vmem:[%s263_s1] sm:$0xff] }
   0x4   :  { %13 = vsyncpa [#allocation5], 0  ;;  %34 = vperm.xlu0 %120, %v30_v0   ;;  %v26_v4 = vadd.f32 %v24_v3, %v22_v1  ;;  %v31_v5 = vld [vmem:[%s264_s2 + $0x8] sm:$0xff]  ;;  %vm63_vm0 = vcmask 1041409   ;;  %v58_v29 = vld [vmem:[%s265_s3] sm:$0x3]  ;;  %v82_v38 = vlaneseq }
   0x5   :  { %v23_v6 = vld [vmem:[%s262_s0 + $0x8] sm:$0xff]  ;;  %vm67_vm1 = vcmask 1041408   ;;  %s174_s2 = smov [#allocation4]  }
   0x6   :  { %v25_v7 = vld [vmem:[%s263_s1 + $0x8] sm:$0xff]  ;;  %28 = vst [vmem:[%s266_s4] sm:$0xff] %v26_v4  ;;  %v83_v39 = vand.u32 127, %v82_v38 }
   0x7   :  { %v27_v8 = vadd.f32 %v25_v7, %v23_v6 }
   0x8   :  { %39 = vperm.xlu0 %120, %v31_v5   ;;  %84 = vst [vmem:[#allocation4] sm:$0x3] %v83_v39 }
   0x9   :  { %29 = vst [vmem:[%s266_s4 + $0x8] sm:$0xff] %v27_v8  ;;  %s103_s4 = sshll.u32 %s174_s2, 4  ;;  %s104_s4 = int_to_ptr.vmem [resolvable:$true] %s103_s4 }
   0xa   :  { %s125_s13 = scalar_lea.vmem %s104_s4, 32  ;;  %p130_p1 = scmp.lt.s32.totalorder %s104_s4, %s104_s4 }
   0xb   :  { %p126_p0 = scmp.ne.s32.totalorder %s104_s4, %s125_s13  ;;  %p131_p2 = scmp.lt.s32.totalorder %s125_s13, %s125_s13 }
   0xd   :  { %p132_p3 = por %p131_p2, %p130_p1 }
   0xf   :  { %p133_p4 = pnand %p132_p3, %p126_p0 }
  0x83   :  { %v35_v9 = vpop.permute.xlu0 %34 }
  0x84   :  { %v42_v10 = vsub.f32 %v26_v4, %v35_v9 }
  0x86   :  { %v44_v11 = vmul.f32 %v42_v10, %v42_v10 }
  0x87   :  { %v40_v12 = vpop.permute.xlu0 %39 }
  0x88   :  { %v46_v13 = vrot.slane %v44_v11, 4  ;;  %v43_v14 = vsub.f32 %v27_v8, %v40_v12 }
  0x8a   :  { %v47_v15 = vadd.f32 %v46_v13, %v44_v11  ;;  %v45_v16 = vmul.f32 %v43_v14, %v43_v14 }
  0x8c   :  { %v48_v17 = vrot.slane %v47_v15, 2  ;;  %v52_v18 = vrot.slane %v45_v16, 4 }
  0x8e   :  { %v49_v19 = vadd.f32 %v48_v17, %v47_v15  ;;  %v53_v20 = vadd.f32 %v52_v18, %v45_v16 }
  0x90   :  { %v50_v21 = vrot.slane %v49_v19, 1  ;;  %v54_v22 = vrot.slane %v53_v20, 2 }
  0x92   :  { %v55_v23 = vadd.f32 %v54_v22, %v53_v20  ;;  %v51_v24 = vadd.f32 %v50_v21, %v49_v19 }
  0x94   :  { %v56_v25 = vrot.slane %v55_v23, 1  ;;  %v59_v27 = vmul.f32 -50.0, %v51_v24 }
  0x96   :  { %v57_v26 = vadd.f32 %v56_v25, %v55_v23 }
  0x98   :  { %v60_v28 = vmul.f32 -50.0, %v57_v26 }
  0x9a   :  { %v64_v30 = vsel %vm63_vm0, %v60_v28, %v59_v27 }
  0x9b   :  { %v66_v31 = vadd.f32 %v64_v30, %v58_v29 }
  0x9d   :  { %v68_v32 = vsel %vm67_vm1, %v66_v31, -inf }
  0x9e   :  { %69 = vmax.xlane.f32.xlu1 %v68_v32 }
 0x12b   :  { %v70_v33 = vpop.xlane.xlu1 %69 }
 0x12c   :  { %v71_v34 = vsub.f32 %v66_v31, %v70_v33 }
 0x12e   :  { %v72_v35 = vmul.f32 1.442695, %v71_v34 }
 0x130   :  { %121 = vpow2.f32 %v72_v35 }
 0x13a   :  { %v122_v36 = vpop.eup %121 }
 0x13b   :  { %v74_v37 = vsel %vm67_vm1, %v122_v36, 0.0 }
 0x13c   :  { %75 = vadd.xlane.f32.xlu1 %v74_v37 }
 0x13d   :  { %136 = shalt.err (!%p133_p4)
}
 0x13e   :  { %s137_s15 = scalar_lea.hbm %s268_s6, 32 }
 0x13f   :  { %p138_p5 = scmp.ne.s32.totalorder %s268_s6, %s137_s15  ;;  %p141_p6 = scmp.lt.u32.totalorder %s137_s15, %s268_s6 }
 0x141   :  { %p143_p7 = pnand %p141_p6, %p138_p5 }
 0x143   :  { %146 = shalt.err (!%p143_p7)
}
 0x144   :  { %106 = dma.vmem_to_hbm [thread:$0]  %s104_s4, 32, %s268_s6, [#allocation5]  }
 0x145   :  { %s175_s22 = smov [#allocation2]  }
 0x146   :  { %s93_s23 = sshll.u32 %s175_s22, 4  ;;  %s94_s23 = int_to_ptr.vmem [resolvable:$true] %s93_s23 }
 0x147   :  { %s147_s24 = scalar_lea.vmem %s94_s23, 32  ;;  %p152_p9 = scmp.lt.s32.totalorder %s94_s23, %s94_s23 }
 0x148   :  { %p148_p8 = scmp.ne.s32.totalorder %s94_s23, %s147_s24  ;;  %p153_p10 = scmp.lt.s32.totalorder %s147_s24, %s147_s24 }
 0x14a   :  { %p154_p11 = por %p153_p10, %p152_p9 }
 0x14c   :  { %p155_p12 = pnand %p154_p11, %p148_p8 }
 0x1c9   :  { %v76_v40 = vpop.xlane.xlu1 %75 }
 0x1ca   :  { %123 = vlog2.f32 %v76_v40 }
 0x1d4   :  { %v124_v41 = vpop.eup %123 }
 0x1d5   :  { %v78_v42 = vmul.f32 0.6931472, %v124_v41 }
 0x1d7   :  { %v79_v43 = vadd.f32 %v78_v42, %v70_v33 }
 0x1d9   :  { %v80_v44 = vsub.f32 %v66_v31, %v79_v43 }
 0x1db   :  { %81 = vst [vmem:[#allocation2] sm:$0x3] %v80_v44 }
 0x1dc   :  { %158 = shalt.err (!%p155_p12)
}
 0x1dd   :  { %s159_s6 = scalar_lea.hbm %s267_s5, 32 }
 0x1de   :  { %p160_p13 = scmp.ne.s32.totalorder %s267_s5, %s159_s6  ;;  %p163_p0 = scmp.lt.u32.totalorder %s159_s6, %s267_s5 }
 0x1e0   :  { %p165_p1 = pnand %p163_p0, %p160_p13 }
 0x1e2   :  { %168 = shalt.err (!%p165_p1)
}
 0x1e3   :  { %96 = dma.vmem_to_hbm [thread:$0]  %s94_s23, 32, %s267_s5, [#allocation3]  }
 0x1e4   :  { %169 = dma.done.wait [#allocation3], 32  }
 0x1e5   :  { %170 = vsyncadd [#allocation3], 4294967264 }
 0x1e6   :  { %171 = dma.done.wait [#allocation5], 32  }
 0x1e7   :  { %172 = vsyncadd [#allocation5], 4294967264 }
 0x1e8   :  { %115 = vsyncpa [#allocation3], 1 }
 0x1e9   :  { %116 = vsyncpa [#allocation5], 1 }

</bundles_post_ra>
